<compile_context>
chip_gen: v6e
topology: v6e:2x2x1
jax: 0.10.0
libtpu: 0.0.40
codegen_flags: <defaults>
</compile_context>

<pallas_src>
import functools
import math

import jax
import jax.numpy as jnp
import numpy as np
from jax import lax
from jax.experimental import pallas as pl
from jax.experimental.pallas import tpu as pltpu


def _smoothness_kernel(d_ref, img_ref, out_ref, *, w_orig, norm_x, norm_y):
    """One (sample, H-tile) cell of the smoothness partial sum.

    Shapes (Lf = F * W lanes, THF folded rows per tile):
      d_ref   : (1, 1, THF, Lf)   inverse depth, folded layout
      img_ref : (1, C, THF, Lf)   image, folded layout
      out_ref : (1, 1, 8, 128) f32  cell partial sum broadcast over the block

    Lane j of a folded row holds (sub-row f, column w) with j = f*W + w.
    """
    f32 = jnp.float32
    _, C, THF, Lf = img_ref.shape
    W = w_orig

    # Small (lane-only / row-only) masks; broadcasting happens lazily.
    lane = lax.broadcasted_iota(jnp.int32, (1, Lf), 1)
    inner_sub = lane < (Lf - W)              # y-partner lives in the same folded row
    # x-pair exists iff the column is not the last one; fold the loss
    # normalizer (and loss_weight) straight into the mask.
    x_scale = jnp.where((lane % W) != (W - 1), f32(norm_x), f32(0.0))     # (1, Lf)

    def _roll(v, shift, axis):
        if shift % v.shape[axis] == 0:
            return v
        return pltpu.roll(v, shift=shift, axis=axis)

    def shift_x(v):                          # value at (same image row, w+1)
        return _roll(v, Lf - 1, 1)

    def shift_y(v):                          # value at (image row + 1, same w)
        c1 = _roll(v, Lf - W, 1)             # next sub-row, same folded row
        if THF == 1:
            return c1
        c2 = _roll(c1, THF - 1, 0)           # first sub-row of next folded row
        return jnp.where(inner_sub, c1, c2)

    # Edge-aware weights, accumulated channel by channel (keeps live f32
    # intermediates at ~2 x (THF, Lf) instead of C x that).
    ic = img_ref[0, 0, :, :].astype(f32)
    gx_abs = jnp.abs(ic - shift_x(ic))
    gy_abs = jnp.abs(ic - shift_y(ic))
    for c in range(1, C):
        ic = img_ref[0, c, :, :].astype(f32)
        gx_abs = gx_abs + jnp.abs(ic - shift_x(ic))
        gy_abs = gy_abs + jnp.abs(ic - shift_y(ic))

    wx = jnp.exp(gx_abs * (-1.0 / C)) * x_scale                            # (THF, Lf)
    wy = jnp.exp(gy_abs * (-1.0 / C)) * f32(norm_y)
    # The last image row of this tile has its y-partner in the next tile (or is
    # the true last row / padding); mask it here — the wrapper's tile-boundary
    # pass accounts for the real cross-tile pairs.
    if THF == 1:
        wy = jnp.where(inner_sub, wy, f32(0.0))
    else:
        row = lax.broadcasted_iota(jnp.int32, (THF, 1), 0)
        tile_tail = jnp.logical_and(row == (THF - 1), jnp.logical_not(inner_sub))
        wy = jnp.where(tile_tail, f32(0.0), wy)

    # Un-normalized inverse-depth gradients; the per-sample 1/clamp(mean) scale
    # is applied to the partial sums in the wrapper (|s*(a-b)| == s*|a-b|).
    d = d_ref[0, 0, :, :].astype(f32)
    part = jnp.sum(jnp.abs(d - shift_x(d)) * wx + jnp.abs(d - shift_y(d)) * wy)

    out_ref[...] = jnp.broadcast_to(part, out_ref.shape).astype(f32)


def _default_budgets():
    """Per-generation (block budget, scoped VMEM limit) in bytes."""
    try:
        vmem_cap = pltpu.get_tpu_info().vmem_capacity_bytes
    except Exception:
        vmem_cap = 64 << 20
    if vmem_cap >= (100 << 20):         # v5e / v6e class (128 MiB VMEM)
        return 12 << 20, 80 << 20
    return 6 << 20, 40 << 20            # v7x class (64 MiB VMEM per TC)


def _choose_tiles(batch, n_chan, hf_raw, lf, itemsize, max_block_bytes, min_cells):
    """Pick the folded-row tile THF and the number of H tiles NH.

    One sample per block along the batch axis (maximal batch-parallel cells,
    no halo).  THF is sublane-aligned (multiple of 8) when the image is large
    enough and sized so that batch * NH >= min_cells (pipelining + both v7x
    TensorCores), while (C+1)*THF*Lf*itemsize stays under max_block_bytes.
    """
    bytes_per_frow = (n_chan + 1) * lf * itemsize
    thf_cap = max(1, max_block_bytes // bytes_per_frow)

    if hf_raw <= 8:
        # Tiny images: one H tile; grid cells come from the batch axis.
        thf = min(hf_raw, thf_cap)
    else:
        want_nh = max(1, -(-min_cells // max(batch, 1)))
        thf = max(1, -(-hf_raw // want_nh))
        thf = min(thf, thf_cap)
        if thf_cap >= 8:
            thf = max(8, (thf // 8) * 8)          # sublane-aligned, >= 8 rows
            # Prefer a tile that divides hf_raw exactly (avoids the pad copy).
            for cand in range(thf, 7, -8):
                if hf_raw % cand == 0:
                    thf = cand
                    break
    nh = -(-hf_raw // thf)
    return thf, nh


def depth_smoothness_loss(inv_depth, images, *, num_scales=1, loss_weight=1.0,
                          max_block_bytes=None, vmem_limit_bytes=None,
                          min_grid_cells=8):
    """Pallas implementation of DepthSmoothnessLoss.forward (num_scales == 1)."""
    assert num_scales == 1, "forward() passes a single scale; num_scales must be 1"
    B, Cd, H, W = inv_depth.shape
    assert Cd == 1
    Bi, C, Hi, Wi = images.shape
    assert (Bi, Hi, Wi) == (B, H, W)
    assert H >= 2 and W >= 2

    blk_default, vmem_default = _default_budgets()
    if max_block_bytes is None:
        max_block_bytes = blk_default
    if vmem_limit_bytes is None:
        vmem_limit_bytes = vmem_default

    f32 = jnp.float32
    # Per-sample normalization (tiny JAX reduction, kept out of the kernel).
    mean_d = jnp.mean(inv_depth.astype(f32), axis=(1, 2, 3))               # (B,)
    scale = 1.0 / jnp.maximum(mean_d, f32(1e-6))                           # (B,)

    # Lane-dense folding: (H, W) -> (H/F, F*W), F*W a multiple of 128.
    F = 128 // math.gcd(W, 128)
    Lf = F * W
    hf_raw = -(-H // F)

    itemsize = images.dtype.itemsize
    THF, NH = _choose_tiles(B, C, hf_raw, Lf, itemsize, max_block_bytes,
                            min_grid_cells)
    HF = NH * THF
    H_pad = HF * F

    # Pad along H when it does not fold/tile evenly:
    #   * depth rows are edge-replicated  -> padded y-gradients are exactly 0
    #   * image pad rows get a +/-1e4 column-alternating pattern -> padded
    #     x-weights underflow to 0, so padded x-gradients contribute nothing.
    if H_pad != H:
        d_pad = jnp.pad(inv_depth, ((0, 0), (0, 0), (0, H_pad - H), (0, 0)),
                        mode="edge")
        col_pat = (jnp.arange(W, dtype=f32) % 2.0) * f32(1e4)
        img_tail = jnp.broadcast_to(col_pat, (B, C, H_pad - H, W)).astype(images.dtype)
        i_pad = jnp.concatenate([images, img_tail], axis=2)
    else:
        d_pad, i_pad = inv_depth, images

    # Contiguous (free) reshapes into the folded layout.
    d_f = d_pad.reshape(B, 1, HF, Lf)
    img_f = i_pad.reshape(B, C, HF, Lf)

    # Fold loss_weight and the mean-normalizers into the kernel weights.
    norm_x = float(loss_weight) / float(B * H * (W - 1))
    norm_y = float(loss_weight) / float(B * (H - 1) * W)

    kernel = functools.partial(_smoothness_kernel, w_orig=W,
                               norm_x=norm_x, norm_y=norm_y)

    out = pl.pallas_call(
        kernel,
        out_shape=jax.ShapeDtypeStruct((B, NH, 8, 128), f32),
        grid=(B, NH),
        in_specs=[
            pl.BlockSpec((1, 1, THF, Lf), lambda b, j: (b, 0, j, 0)),   # depth tile
            pl.BlockSpec((1, C, THF, Lf), lambda b, j: (b, 0, j, 0)),   # image tile
        ],
        out_specs=pl.BlockSpec((1, 1, 8, 128), lambda b, j: (b, j, 0, 0)),
        compiler_params=pltpu.CompilerParams(
            dimension_semantics=("parallel", "parallel"),
            vmem_limit_bytes=vmem_limit_bytes,
        ),
    )(d_f, img_f)

    # Per-sample partial sums, scaled by 1/clamp(mean) in the wrapper.
    per_sample = jnp.sum(out[:, :, 0, 0], axis=1)                          # (B,)
    loss = jnp.sum(per_sample * scale)

    # Tile-boundary y-gradients (the kernel masks the last image row of every
    # H tile).  Tiny strided gather over the original, unpadded arrays.
    b_rows = np.asarray(
        [int(r) for r in (np.arange(1, NH) * (THF * F) - 1) if r < H - 1],
        dtype=np.int32)
    if b_rows.size:
        ia = images[:, :, b_rows, :].astype(f32)
        ib = images[:, :, b_rows + 1, :].astype(f32)
        wyb = jnp.exp(-jnp.mean(jnp.abs(ia - ib), axis=1))                 # (B, nb, W)
        da = inv_depth[:, 0, b_rows, :].astype(f32) * scale[:, None, None]
        db = inv_depth[:, 0, b_rows + 1, :].astype(f32) * scale[:, None, None]
        loss = loss + f32(norm_y) * jnp.sum(jnp.abs(da - db) * wyb)

    # num_scales == 1: the /2**i and /num_scales factors are both 1.
    return loss


def _ref_loss(inv_depth, images, loss_weight=1.0):
    """Pure-JAX reference (mirrors the PyTorch code) for verification."""
    mean_d = inv_depth.mean(axis=(2, 3), keepdims=True)
    dn = inv_depth / jnp.maximum(mean_d, 1e-6)
    gx = lambda x: x[:, :, :, :-1] - x[:, :, :, 1:]
    gy = lambda x: x[:, :, :-1, :] - x[:, :, 1:, :]
    wx = jnp.exp(-jnp.mean(jnp.abs(gx(images)), axis=1, keepdims=True))
    wy = jnp.exp(-jnp.mean(jnp.abs(gy(images)), axis=1, keepdims=True))
    sx = gx(dn) * wx
    sy = gy(dn) * wy
    return loss_weight * (jnp.abs(sx).mean() + jnp.abs(sy).mean())


if __name__ == "__main__":
    root = jax.random.PRNGKey(0)

    def run_case(B, C, H, W, dtype, rtol, atol, key, **kw):
        k1, k2 = jax.random.split(key)
        inv_depth = jax.random.uniform(k1, (B, 1, H, W), jnp.float32, 0.05, 1.0).astype(dtype)
        images = jax.random.uniform(k2, (B, C, H, W), jnp.float32, 0.0, 1.0).astype(dtype)
        loss = jax.block_until_ready(
            depth_smoothness_loss(inv_depth, images, num_scales=1, loss_weight=1.0, **kw))
        ref = jax.block_until_ready(
            _ref_loss(inv_depth.astype(jnp.float32), images.astype(jnp.float32)))
        assert np.allclose(np.asarray(loss), np.asarray(ref), rtol=rtol, atol=atol), (
            (B, C, H, W, str(dtype)), float(loss), float(ref))

    keys = jax.random.split(root, 6)
    # Small demo shape: folded to 128 lanes, grid (2, 1), no padding.
    run_case(2, 3, 16, 16, jnp.float32, 1e-4, 1e-6, keys[0])
    # Multi-tile grid (4, 2): one tile-boundary y row handled in the wrapper.
    run_case(4, 3, 256, 16, jnp.float32, 1e-4, 1e-6, keys[1])
    # Tight block budget -> 8-folded-row tiles, grid (4, 4), three boundary rows.
    run_case(4, 3, 256, 16, jnp.float32, 1e-4, 1e-6, keys[2], max_block_bytes=20000)
    # Already lane-dense W (no folding), tiled over H, grid (2, 4).
    run_case(2, 3, 32, 128, jnp.float32, 1e-4, 1e-6, keys[3])
    # H padded to the folded/tiled layout (100 -> 128 rows) + a boundary row.
    run_case(2, 3, 100, 16, jnp.float32, 1e-4, 1e-6, keys[4])
    # bf16 inputs pass through untouched; kernel math stays in f32.
    run_case(2, 3, 16, 16, jnp.bfloat16, 2e-3, 1e-5, keys[5])

    print("KERNEL_OK")
</pallas_src>

<mosaic_0001>
module attributes {stable_mosaic.version = 11 : i64} {
  func.func @_smoothness_kernel(%arg0: i32, %arg1: i32, %arg2: memref<1x1x2x128xf32, #tpu.memory_space<vmem>>, %arg3: memref<1x3x2x128xf32, #tpu.memory_space<vmem>>, %arg4: memref<1x1x8x128xf32, #tpu.memory_space<vmem>>) attributes {dimension_semantics = [#tpu.dimension_semantics<parallel>, #tpu.dimension_semantics<parallel>], iteration_bounds = array<i64: 2, 1>, scalar_prefetch = 0 : i64, scratch_operands = 0 : i64, tpu.core_type = #tpu.core_type<tc>, window_params = [{transform_indices = @transform_0, window_bounds = array<i64: 1, 1, 2, 128>}, {transform_indices = @transform_1, window_bounds = array<i64: 1, 3, 2, 128>}, {transform_indices = @transform_2, window_bounds = array<i64: 1, 1, 8, 128>}]} {
    %0 = tpu.iota {dimensions = array<i32: 1>} : vector<1x128xi32>
    %c112_i32 = arith.constant 112 : i32
    %1 = vector.broadcast %c112_i32 : i32 to vector<1x128xi32>
    %2 = arith.cmpi slt, %0, %1 : vector<1x128xi32>
    %c16_i32 = arith.constant 16 : i32
    %c0_i32 = arith.constant 0 : i32
    %3 = arith.cmpi eq, %c16_i32, %c0_i32 : i32
    %c1_i32 = arith.constant 1 : i32
    %4 = arith.select %3, %c1_i32, %c16_i32 : i32
    %5 = vector.broadcast %4 : i32 to vector<1x128xi32>
    %6 = arith.remsi %0, %5 : vector<1x128xi32>
    %c0_i32_0 = arith.constant 0 : i32
    %7 = vector.broadcast %c0_i32_0 : i32 to vector<1x128xi32>
    %8 = arith.cmpi ne, %6, %7 : vector<1x128xi32>
    %c0_i32_1 = arith.constant 0 : i32
    %9 = vector.broadcast %c0_i32_1 : i32 to vector<1x128xi32>
    %10 = arith.cmpi slt, %6, %9 : vector<1x128xi32>
    %c0_i32_2 = arith.constant 0 : i32
    %11 = arith.cmpi slt, %4, %c0_i32_2 : i32
    %12 = vector.broadcast %11 : i1 to vector<1x128xi1>
    %13 = vector.broadcast %12 : vector<1x128xi1> to vector<1x128xi1>
    %14 = arith.xori %10, %13 : vector<1x128xi1>
    %15 = arith.andi %14, %8 : vector<1x128xi1>
    %16 = vector.broadcast %4 : i32 to vector<1x128xi32>
    %17 = arith.addi %6, %16 : vector<1x128xi32>
    %18 = arith.select %15, %17, %6 : vector<1x128xi1>, vector<1x128xi32>
    %c15_i32 = arith.constant 15 : i32
    %19 = vector.broadcast %c15_i32 : i32 to vector<1x128xi32>
    %20 = arith.cmpi ne, %18, %19 : vector<1x128xi32>
    %cst = arith.constant 0.00208333344 : f32
    %cst_3 = arith.constant 0.000000e+00 : f32
    %21 = vector.broadcast %cst : f32 to vector<1x128xf32>
    %22 = vector.broadcast %cst_3 : f32 to vector<1x128xf32>
    %23 = arith.select %20, %21, %22 : vector<1x128xi1>, vector<1x128xf32>
    %c0 = arith.constant 0 : index
    %c0_4 = arith.constant 0 : index
    %c0_5 = arith.constant 0 : index
    %c0_6 = arith.constant 0 : index
    %24 = vector.load %arg3[%c0, %c0_4, %c0_5, %c0_6] : memref<1x3x2x128xf32, #tpu.memory_space<vmem>>, vector<1x1x2x128xf32>
    %25 = vector.shape_cast %24 : vector<1x1x2x128xf32> to vector<2x128xf32>
    %c127_i32 = arith.constant 127 : i32
    %26 = tpu.dynamic_rotate %25 by %c127_i32 dim 1 : vector<2x128xf32>, i32 -> vector<2x128xf32>
    %27 = arith.subf %25, %26 : vector<2x128xf32>
    %28 = math.absf %27 : vector<2x128xf32>
    %c112_i32_7 = arith.constant 112 : i32
    %29 = tpu.dynamic_rotate %25 by %c112_i32_7 dim 1 : vector<2x128xf32>, i32 -> vector<2x128xf32>
    %c1_i32_8 = arith.constant 1 : i32
    %30 = tpu.dynamic_rotate %29 by %c1_i32_8 dim 0 : vector<2x128xf32>, i32 -> vector<2x128xf32>
    %31 = vector.shape_cast %2 : vector<1x128xi1> to vector<1x128xi1>
    %32 = vector.broadcast %31 : vector<1x128xi1> to vector<2x128xi1>
    %33 = arith.select %32, %29, %30 : vector<2x128xi1>, vector<2x128xf32>
    %34 = arith.subf %25, %33 : vector<2x128xf32>
    %35 = math.absf %34 : vector<2x128xf32>
    %c0_9 = arith.constant 0 : index
    %c1 = arith.constant 1 : index
    %c0_10 = arith.constant 0 : index
    %c0_11 = arith.constant 0 : index
    %36 = vector.load %arg3[%c0_9, %c1, %c0_10, %c0_11] : memref<1x3x2x128xf32, #tpu.memory_space<vmem>>, vector<1x1x2x128xf32>
    %37 = vector.shape_cast %36 : vector<1x1x2x128xf32> to vector<2x128xf32>
    %c127_i32_12 = arith.constant 127 : i32
    %38 = tpu.dynamic_rotate %37 by %c127_i32_12 dim 1 : vector<2x128xf32>, i32 -> vector<2x128xf32>
    %39 = arith.subf %37, %38 : vector<2x128xf32>
    %40 = math.absf %39 : vector<2x128xf32>
    %41 = arith.addf %28, %40 : vector<2x128xf32>
    %c112_i32_13 = arith.constant 112 : i32
    %42 = tpu.dynamic_rotate %37 by %c112_i32_13 dim 1 : vector<2x128xf32>, i32 -> vector<2x128xf32>
    %c1_i32_14 = arith.constant 1 : i32
    %43 = tpu.dynamic_rotate %42 by %c1_i32_14 dim 0 : vector<2x128xf32>, i32 -> vector<2x128xf32>
    %44 = vector.shape_cast %2 : vector<1x128xi1> to vector<1x128xi1>
    %45 = vector.broadcast %44 : vector<1x128xi1> to vector<2x128xi1>
    %46 = arith.select %45, %42, %43 : vector<2x128xi1>, vector<2x128xf32>
    %47 = arith.subf %37, %46 : vector<2x128xf32>
    %48 = math.absf %47 : vector<2x128xf32>
    %49 = arith.addf %35, %48 : vector<2x128xf32>
    %c0_15 = arith.constant 0 : index
    %c2 = arith.constant 2 : index
    %c0_16 = arith.constant 0 : index
    %c0_17 = arith.constant 0 : index
    %50 = vector.load %arg3[%c0_15, %c2, %c0_16, %c0_17] : memref<1x3x2x128xf32, #tpu.memory_space<vmem>>, vector<1x1x2x128xf32>
    %51 = vector.shape_cast %50 : vector<1x1x2x128xf32> to vector<2x128xf32>
    %c127_i32_18 = arith.constant 127 : i32
    %52 = tpu.dynamic_rotate %51 by %c127_i32_18 dim 1 : vector<2x128xf32>, i32 -> vector<2x128xf32>
    %53 = arith.subf %51, %52 : vector<2x128xf32>
    %54 = math.absf %53 : vector<2x128xf32>
    %55 = arith.addf %41, %54 : vector<2x128xf32>
    %c112_i32_19 = arith.constant 112 : i32
    %56 = tpu.dynamic_rotate %51 by %c112_i32_19 dim 1 : vector<2x128xf32>, i32 -> vector<2x128xf32>
    %c1_i32_20 = arith.constant 1 : i32
    %57 = tpu.dynamic_rotate %56 by %c1_i32_20 dim 0 : vector<2x128xf32>, i32 -> vector<2x128xf32>
    %58 = vector.shape_cast %2 : vector<1x128xi1> to vector<1x128xi1>
    %59 = vector.broadcast %58 : vector<1x128xi1> to vector<2x128xi1>
    %60 = arith.select %59, %56, %57 : vector<2x128xi1>, vector<2x128xf32>
    %61 = arith.subf %51, %60 : vector<2x128xf32>
    %62 = math.absf %61 : vector<2x128xf32>
    %63 = arith.addf %49, %62 : vector<2x128xf32>
    %cst_21 = arith.constant -0.333333343 : f32
    %64 = vector.broadcast %cst_21 : f32 to vector<2x128xf32>
    %65 = arith.mulf %55, %64 : vector<2x128xf32>
    %66 = math.exp %65 : vector<2x128xf32>
    %67 = vector.broadcast %23 : vector<1x128xf32> to vector<2x128xf32>
    %68 = arith.mulf %66, %67 : vector<2x128xf32>
    %cst_22 = arith.constant -0.333333343 : f32
    %69 = vector.broadcast %cst_22 : f32 to vector<2x128xf32>
    %70 = arith.mulf %63, %69 : vector<2x128xf32>
    %71 = math.exp %70 : vector<2x128xf32>
    %cst_23 = arith.constant 0.00208333344 : f32
    %72 = vector.broadcast %cst_23 : f32 to vector<2x128xf32>
    %73 = arith.mulf %71, %72 : vector<2x128xf32>
    %74 = tpu.iota {dimensions = array<i32: 0>} : vector<2x1xi32>
    %c1_i32_24 = arith.constant 1 : i32
    %75 = vector.broadcast %c1_i32_24 : i32 to vector<2x1xi32>
    %76 = arith.cmpi eq, %74, %75 : vector<2x1xi32>
    %cst_25 = arith.constant dense<true> : vector<1x128xi1>
    %77 = arith.xori %2, %cst_25 : vector<1x128xi1>
    %78 = vector.broadcast %76 : vector<2x1xi1> to vector<2x128xi1>
    %79 = vector.broadcast %77 : vector<1x128xi1> to vector<2x128xi1>
    %80 = arith.andi %78, %79 : vector<2x128xi1>
    %cst_26 = arith.constant 0.000000e+00 : f32
    %81 = vector.broadcast %cst_26 : f32 to vector<2x128xf32>
    %82 = arith.select %80, %81, %73 : vector<2x128xi1>, vector<2x128xf32>
    %c0_27 = arith.constant 0 : index
    %c0_28 = arith.constant 0 : index
    %c0_29 = arith.constant 0 : index
    %c0_30 = arith.constant 0 : index
    %83 = vector.load %arg2[%c0_27, %c0_28, %c0_29, %c0_30] : memref<1x1x2x128xf32, #tpu.memory_space<vmem>>, vector<1x1x2x128xf32>
    %84 = vector.shape_cast %83 : vector<1x1x2x128xf32> to vector<2x128xf32>
    %c127_i32_31 = arith.constant 127 : i32
    %85 = tpu.dynamic_rotate %84 by %c127_i32_31 dim 1 : vector<2x128xf32>, i32 -> vector<2x128xf32>
    %86 = arith.subf %84, %85 : vector<2x128xf32>
    %87 = math.absf %86 : vector<2x128xf32>
    %88 = arith.mulf %87, %68 : vector<2x128xf32>
    %c112_i32_32 = arith.constant 112 : i32
    %89 = tpu.dynamic_rotate %84 by %c112_i32_32 dim 1 : vector<2x128xf32>, i32 -> vector<2x128xf32>
    %c1_i32_33 = arith.constant 1 : i32
    %90 = tpu.dynamic_rotate %89 by %c1_i32_33 dim 0 : vector<2x128xf32>, i32 -> vector<2x128xf32>
    %91 = vector.shape_cast %2 : vector<1x128xi1> to vector<1x128xi1>
    %92 = vector.broadcast %91 : vector<1x128xi1> to vector<2x128xi1>
    %93 = arith.select %92, %89, %90 : vector<2x128xi1>, vector<2x128xf32>
    %94 = arith.subf %84, %93 : vector<2x128xf32>
    %95 = math.absf %94 : vector<2x128xf32>
    %96 = arith.mulf %95, %82 : vector<2x128xf32>
    %97 = arith.addf %88, %96 : vector<2x128xf32>
    %98 = vector.shape_cast %97 : vector<2x128xf32> to vector<1x2x128xf32>
    %cst_34 = arith.constant dense<0.000000e+00> : vector<1xf32>
    %99 = vector.multi_reduction <add>, %98, %cst_34 [1, 2] : vector<1x2x128xf32> to vector<1xf32>
    %100 = vector.shape_cast %99 : vector<1xf32> to vector<1x1x1xf32>
    %101 = vector.extract %100[0, 0, 0] : f32 from vector<1x1x1xf32>
    %102 = vector.broadcast %101 : f32 to vector<1x1x8x128xf32>
    %c0_35 = arith.constant 0 : index
    %c0_36 = arith.constant 0 : index
    %c0_37 = arith.constant 0 : index
    %c0_38 = arith.constant 0 : index
    %103 = vector.load %arg4[%c0_35, %c0_36, %c0_37, %c0_38] : memref<1x1x8x128xf32, #tpu.memory_space<vmem>>, vector<1x1x8x128xf32>
    tpu.vector_store %arg4[%c0_35, %c0_36, %c0_37, %c0_38], %102 {strides = array<i32>} : memref<1x1x8x128xf32, #tpu.memory_space<vmem>>, vector<1x1x8x128xf32>,
    return
  }
  func.func @transform_0(%arg0: i32, %arg1: i32) -> (i32, i32, i32, i32) {
    %c0_i32 = arith.constant 0 : i32
    %c0_i32_0 = arith.constant 0 : i32
    %c0_i32_1 = arith.constant 0 : i32
    return %arg0, %c0_i32, %arg1, %c0_i32_0 : i32, i32, i32, i32
  }
  func.func @transform_1(%arg0: i32, %arg1: i32) -> (i32, i32, i32, i32) {
    %c0_i32 = arith.constant 0 : i32
    %c0_i32_0 = arith.constant 0 : i32
    %c0_i32_1 = arith.constant 0 : i32
    return %arg0, %c0_i32, %arg1, %c0_i32_0 : i32, i32, i32, i32
  }
  func.func @transform_2(%arg0: i32, %arg1: i32) -> (i32, i32, i32, i32) {
    %c0_i32 = arith.constant 0 : i32
    %c0_i32_0 = arith.constant 0 : i32
    %c0_i32_1 = arith.constant 0 : i32
    return %arg0, %arg1, %c0_i32, %c0_i32_0 : i32, i32, i32, i32
  }
}

</mosaic_0001>

<bundles_post_ra>
// kernel: tpu_custom_call.1
= control target key start
LH: loop header
LB: loop body
LE: loop exit
PB: predicated region body
PF: predicated region fallthrough
CT: control target
= control target key end

     0   :  { %7 = vsyncpa [#allocation3], 0  ;;  %s921_s0 = inlined_call_operand.hbm [shape: f32[2,1,2,128], index: 0, kind: input, shape index: {}]   ;;  %s922_s1 = inlined_call_operand.hbm [shape: f32[2,3,2,128], index: 1, kind: input, shape index: {}]   ;;  %s923_s2 = inlined_call_operand.hbm [shape: f32[2,1,8,128], index: 2, kind: output, shape index: {}]  }
   0x1   :  { %9 = vsyncpa [#allocation3 + $0x1], 0 }
   0x2   :  { %10 = vsyncpa [#allocation6], 0 }
   0x3   :  { %12 = vsyncpa [#allocation6 + $0x1], 0 }
   0x4   :  { %13 = vsyncpa [#allocation4], 0 }
   0x5   :  { %15 = vsyncpa [#allocation4 + $0x1], 0  ;;  %s731_s9 = smov 0   ;;  %s733_s10 = smov 0  }
   0x6   :  { %s735_s11 = smov 0   ;;  %s737_s12 = smov 0  }
   0x7   :  { %s739_s13 = smov 0   ;;  %s741_s14 = smov 0  }
   0x8 LB: > { %s467_s15 = sadd.s32 4294967295, %s705_s14   ;;  %s468_s16 = sadd.s32 4294967294, %s705_s14   ;;  %s705_s14 = sphi %s741_s14, %s21_s14   ;;  %s701_s13 = sphi %s739_s13, %s935_s13   ;;  %s697_s12 = sphi %s737_s12, %s934_s12   ;;  %s693_s11 = sphi %s735_s11, %s933_s11   ;;  %s689_s10 = sphi %s733_s10, %s932_s10   ;;  %s685_s9 = sphi %s731_s9, %s931_s9  }
   0x9   : > { %s33_s17 = sadd.s32 1, %s701_s13  ;;  %s42_s18 = sadd.s32 1, %s693_s11 }
   0xa   : > { %p35_p0 = scmp.ge.s32.totalorder %s33_s17, 2  ;;  %p49_p1 = scmp.ne.s32.totalorder %s693_s11, %s689_s10 }
   0xb   : > { %p50_p2 = scmp.eq.s32.totalorder %s705_s14, 0  ;;  %p55_p3 = scmp.ne.s32.totalorder %s689_s10, %s685_s9 }
   0xc   : > { %s937_s17 = smov (%p35_p0, %s33_s17), 0  ;;  %p56_p5 = scmp.eq.s32.totalorder %s467_s15, 0 }
   0xd   : > { %p772_p4 = por %p50_p2, %p49_p1  ;;  %s37_s20 = ssub.s32 %s701_s13, %s937_s17 }
   0xe   : > { %p109_p6 = scmp.eq.s32.totalorder %s467_s15, 1  ;;  %p40_p7 = scmp.eq.s32.totalorder %s37_s20, 0 }
   0xf   : > { %p778_p8 = por %p56_p5, %p55_p3  ;;  %p115_p10 = scmp.eq.s32.totalorder %s468_s16, 1 }
  0x10   : > { %p782_p9 = por %p109_p6, %p49_p1  ;;  %p505_p13 = scmp.lt.s32.totalorder %s705_s14, 2 }
  0x11   : > { %s787_s23 = scalar_select %p40_p7, %s693_s11, %s42_s18  }
  0x12   : > { %p789_p11 = por %p115_p10, %p55_p3  ;;  %s796_s25 = sand.u32 1, %s693_s11  }
  0x13   : > { %s471_s26 = sshll.u32 %s796_s25, 1  ;;  %s472_s27 = sshll.u32 %s701_s13, 5 }
  0x14   : > { %s145_s30 = scalar_lea.hbm %s921_s0, %s472_s27  ;;  %s139_s3 = scalar_lea.vmem [#allocation2], %s471_s26 }
  0x15   : > { %s147_s4 = sshll.u32 %s139_s3, 4  ;;  %p805_p0 = pnand %p505_p13, %p772_p4  ;;  %s148_s4 = int_to_ptr.vmem [resolvable:$true] %s147_s4 }
  0x16   : > { %p474_p1 = scmp.ge.s32.totalorder %s705_s14, 1  ;;  %p174_p2 = scmp.lt.s32.totalorder %s705_s14, 3 }
  0x17   : > { %s136_s6 = scalar_lea.sflag [#allocation3], %s796_s25  ;;  %p567_p3 = pneg %p805_p0 }
  0x18   : > { %s578_s7 = scalar_lea.vmem %s148_s4, 32  ;;  %s707_s8 = smov [#allocation2]  }
  0x19   : > { %p579_p5 = scmp.ne.s32.totalorder %s148_s4, %s578_s7  ;;  %s583_s15 = sshll.u32 %s707_s8, 4  ;;  %s584_s15 = int_to_ptr.vmem [resolvable:$false] %s583_s15 }
  0x1a   : > { %s585_s16 = scalar_lea.vmem %s584_s15, 64  ;;  %p586_p4 = scmp.lt.s32.totalorder %s148_s4, %s584_s15 }
  0x1b   : > { %p581_p6 = pnand %p579_p5, %p567_p3  ;;  %p587_p10 = scmp.lt.s32.totalorder %s585_s16, %s578_s7 }
  0x1d   : > { %p582_p7 = pneg %p581_p6  ;;  %p588_p13 = por %p587_p10, %p586_p4 }
  0x1f   : > { %p589_p12 = pnand %p588_p13, %p582_p7 }
  0x21   : > { %592 = shalt.err (!%p589_p12)
}
  0x22   : > { %497 = dma.hbm_to_vmem [thread:$0]  (!%p805_p0), %s145_s30, 32, %s148_s4, %s136_s6  }
  0x23   : > { %p823_p5 = pnand %p474_p1, %p174_p2  ;;  %s483_s19 = smul.u32 6, %s796_s25 }
  0x24   : > { %s484_s20 = smul.u32 96, %s701_s13  ;;  %s155_s7 = scalar_lea.sflag [#allocation6], %s796_s25 }
  0x25   : > { %s158_s29 = scalar_lea.vmem [#allocation5], %s483_s19  ;;  %s708_s30 = smov [#allocation5]  }
  0x26   : > { %s165_s28 = scalar_lea.hbm %s922_s1, %s484_s20  ;;  %s166_s3 = sshll.u32 %s158_s29, 4  ;;  %s167_s3 = int_to_ptr.vmem [resolvable:$true] %s166_s3 }
  0x27   : > { %s606_s8 = scalar_lea.vmem %s167_s3, 96  ;;  %s611_s4 = sshll.u32 %s708_s30, 4  ;;  %s612_s4 = int_to_ptr.vmem [resolvable:$false] %s611_s4 }
  0x28   : > { %p607_p12 = scmp.ne.s32.totalorder %s167_s3, %s606_s8  ;;  %s613_s6 = scalar_lea.vmem %s612_s4, 192 }
  0x29   : > { %p614_p1 = scmp.lt.s32.totalorder %s167_s3, %s612_s4  ;;  %p615_p2 = scmp.lt.s32.totalorder %s613_s6, %s606_s8 }
  0x2a   : > { %p609_p6 = pnand %p607_p12, %p567_p3 }
  0x2b   : > { %p616_p4 = por %p615_p2, %p614_p1 }
  0x2c   : > { %p610_p7 = pneg %p609_p6 }
  0x2e   : > { %p617_p10 = pnand %p616_p4, %p610_p7 }
  0x30   : > { %620 = shalt.err (!%p617_p10)
}
  0x31   : > { %s709_s15 = smov 32   ;;  %s710_s16 = smov 2  }
  0x32   : > { %500 = dma.hbm_to_vmem [thread:$0]  (!%p805_p0), %s165_s28, 96, %s167_s3, %s155_s7, %s709_s15, %s709_s15, %s710_s16  }
  0x33   : > { %178 = sbr.rel (%p823_p5) target bundleno = 438 (0x1b6), region = 28  ;;  %s841_s25 = sand.u32 (!%p823_p5), 1, %s689_s10  }
  0x34   : > { %s475_s19 = sshll.u32 (!%p823_p5), %s841_s25, 1  ;;  %s181_s20 = scalar_lea.sflag (!%p823_p5), [#allocation3], %s841_s25 }
  0x35   : > { %s184_s26 = scalar_lea.vmem (!%p823_p5), [#allocation2], %s475_s19 }
  0x38   : > { %672 = dma.done.wait (%p778_p8), %s181_s20, 32  }
  0x39   : > { %674 = vsyncadd (%p778_p8), %s181_s20, 4294967264  ;;  %s485_s5 = smul.u32 6, %s841_s25  ;;  %s190_s18 = scalar_lea.sflag [#allocation6], %s841_s25 }
  0x3b   : > { %s193_s27 = scalar_lea.vmem [#allocation5], %s485_s5 }
  0x3c   : > { %676 = dma.done.wait (%p778_p8), %s190_s18, 96  }
  0x3d   : > { %678 = vsyncadd (%p778_p8), %s190_s18, 4294967200  ;;  %v478_v0 = vld [vmem:[%s193_s27 + $0x4] sm:$0x3]  ;;  %v236_v1 = vld [vmem:[%s193_s27] sm:$0x3]  ;;  %s711_s28 = smov 112   ;;  %v219_v4 = vlaneseq }
  0x3e   : > { %283 = vrot.lane.b32.xlu1 %v478_v0, %s711_s28  ;;  %241 = vrot.lane.b32.xlu0 %v236_v1, %s711_s28  ;;  %v477_v2 = vld [vmem:[%s193_s27 + $0x2] sm:$0x3]  ;;  %s712_s29 = smov 127   ;;  %v855_v3 = vld [vmem:[%s184_s26] sm:$0x3]  ;;  %vm243_vm0 = vcmask 1047554  }
  0x3f   : > { %v220_v9 = vand.u32 127, %v219_v4  ;;  %v305_v58 = vshrl.u32 %v219_v4, 7  ;;  %v713_v62 = vmov 0.0   ;;  %vm714_vm4 = vmmov 1   ;;  %s476_s21 = sshll.u32 %s841_s25, 3  ;;  %s480_s8 = sshll.u32 %s697_s12, 7 }
  0x40   : > { %vm334_vm7 = vcmask 1041408   ;;  %s218_s3 = scalar_lea.vmem [#allocation7], %s476_s21  ;;  %s360_s15 = scalar_lea.hbm %s923_s2, %s480_s8 }
  0x41   : > { %vm221_vm1 = vcmp.lt.s32.totalorder %v220_v9, 112  ;;  %v226_v55 = vand.u32 15, %v220_v9  ;;  %vm306_vm3 = vcmp.eq.s32.totalorder %v305_v58, 1  ;;  %s362_s7 = sshll.u32 %s218_s3, 4  ;;  %s348_s16 = scalar_lea.sflag [#allocation4], %s841_s25  ;;  %s876_s7 = int_to_ptr.vmem [resolvable:$true] %s362_s7 }
  0x42   : > { %263 = vrot.lane.b32.xlu0 %v477_v2, %s711_s28  ;;  %237 = vrot.lane.b32.xlu1 %v236_v1, %s712_s29  ;;  %vm307_vm5 = vmxor %vm221_vm1, %vm714_vm4  ;;  %s621_s19 = scalar_lea.vmem %s876_s7, 128  ;;  %s715_s20 = smov [#allocation7]  }
  0x43   : > { %vm234_vm2 = vcmp.ne.s32.totalorder %v226_v55, 15  ;;  %vm312_vm6 = vmand %vm306_vm3, %vm307_vm5  ;;  %p622_p8 = scmp.ne.s32.totalorder %s876_s7, %s621_s19  ;;  %s625_s12 = sshll.u32 %s715_s20, 4  ;;  %s626_s12 = int_to_ptr.vmem [resolvable:$false] %s625_s12 }
  0x44   : > { %v235_v63 = vsel %vm234_vm2, 0.0020833334, %v713_v62  ;;  %s627_s26 = scalar_lea.vmem %s626_s12, 256  ;;  %p628_p13 = scmp.lt.s32.totalorder %s876_s7, %s626_s12 }
  0x45   : > { %p623_p0 = pnand %p622_p8, %p782_p9  ;;  %p629_p5 = scmp.lt.s32.totalorder %s627_s26, %s621_s19 }
  0x46   : > { %258 = vrot.lane.b32.xlu0 %v477_v2, %s712_s29  ;;  %278 = vrot.lane.b32.xlu1 %v478_v0, %s712_s29 }
  0x47   : > { %p624_p3 = pneg %p623_p0  ;;  %p630_p12 = por %p629_p5, %p628_p13 }
  0x49   : > { %p631_p6 = pnand %p630_p12, %p624_p3 }
  0x4a   : > { %320 = vrot.lane.b32.xlu0 %v855_v3, %s711_s28  ;;  %315 = vrot.lane.b32.xlu1 %v855_v3, %s712_s29 }
  0xb0   : > { %v284_v5 = vpop.permute.xlu1 %283  ;;  %v242_v6 = vpop.permute.xlu0 %241 }
  0xb1   : > { %v285_v7 = vrot.slane %v284_v5, 6  ;;  %v244_v8 = vrot.slane %v242_v6, 6 }
  0xb3   : > { %v286_v10 = vsel %vm243_vm0, %v285_v7, %v284_v5  ;;  %v245_v11 = vsel %vm243_vm0, %v244_v8, %v242_v6 }
  0xb4   : > { %v287_v12 = vrot.slane %v286_v10, 6  ;;  %v246_v13 = vrot.slane %v245_v11, 6  ;;  %v264_v14 = vpop.permute.xlu0 %263  ;;  %v238_v15 = vpop.permute.xlu1 %237 }
  0xb5   : > { %v265_v16 = vrot.slane %v264_v14, 6  ;;  %v239_v17 = vsub.f32 %v236_v1, %v238_v15 }
  0xb6   : > { %v288_v18 = vsel %vm243_vm0, %v287_v12, %v284_v5  ;;  %v247_v19 = vsel %vm243_vm0, %v246_v13, %v242_v6 }
  0xb7   : > { %v290_v20 = vrot.slane %v288_v18, 1  ;;  %v251_v21 = vrot.slane %v247_v19, 1  ;;  %v266_v22 = vsel %vm243_vm0, %v265_v16, %v264_v14  ;;  %v240_v27 = vand.u32 2147483647, %v239_v17 }
  0xb8   : > { %v267_v23 = vrot.slane %v266_v22, 6  ;;  %v259_v24 = vpop.permute.xlu0 %258  ;;  %v279_v25 = vpop.permute.xlu1 %278 }
  0xb9   : > { %v253_v26 = vsel %vm221_vm1, %v242_v6, %v251_v21  ;;  %v260_v28 = vsub.f32 %v477_v2, %v259_v24  ;;  %v280_v29 = vsub.f32 %v478_v0, %v279_v25  ;;  %v292_v31 = vsel %vm221_vm1, %v284_v5, %v290_v20 }
  0xba   : > { %v268_v30 = vsel %vm243_vm0, %v267_v23, %v264_v14  ;;  %v254_v35 = vsub.f32 %v236_v1, %v253_v26  ;;  %v293_v39 = vsub.f32 %v478_v0, %v292_v31 }
  0xbb   : > { %v270_v32 = vrot.slane %v268_v30, 1  ;;  %v261_v33 = vand.u32 2147483647, %v260_v28  ;;  %v281_v34 = vand.u32 2147483647, %v280_v29 }
  0xbc   : > { %v321_v38 = vpop.permute.xlu0 %320  ;;  %v255_v42 = vand.u32 2147483647, %v254_v35  ;;  %v294_v46 = vand.u32 2147483647, %v293_v39  ;;  %v316_v57 = vpop.permute.xlu1 %315 }
  0xbd   : > { %v272_v36 = vsel %vm221_vm1, %v264_v14, %v270_v32  ;;  %v262_v37 = vadd.f32 %v261_v33, %v240_v27  ;;  %v322_v44 = vrot.slane %v321_v38, 6  ;;  %v317_v60 = vsub.f32 %v855_v3, %v316_v57 }
  0xbe   : > { %v273_v40 = vsub.f32 %v477_v2, %v272_v36 }
  0xbf   : > { %v282_v41 = vadd.f32 %v281_v34, %v262_v37  ;;  %v323_v50 = vsel %vm243_vm0, %v322_v44, %v321_v38  ;;  %v318_v5 = vand.u32 2147483647, %v317_v60 }
  0xc0   : > { %v274_v43 = vand.u32 2147483647, %v273_v40  ;;  %v324_v52 = vrot.slane %v323_v50, 6 }
  0xc1   : > { %v296_v45 = vmul.f32 -0.33333334, %v282_v41 }
  0xc2   : > { %v275_v47 = vadd.f32 %v274_v43, %v255_v42  ;;  %v325_v54 = vsel %vm243_vm0, %v324_v52, %v321_v38 }
  0xc3   : > { %v297_v48 = vmul.f32 1.442695, %v296_v45  ;;  %v327_v56 = vrot.slane %v325_v54, 1 }
  0xc4   : > { %v295_v49 = vadd.f32 %v294_v46, %v275_v47 }
  0xc5   : > { %561 = vpow2.f32 %v297_v48  ;;  %v329_v59 = vsel %vm221_vm1, %v321_v38, %v327_v56 }
  0xc6   : > { %v300_v51 = vmul.f32 -0.33333334, %v295_v49  ;;  %v330_v0 = vsub.f32 %v855_v3, %v329_v59 }
  0xc8   : > { %v301_v53 = vmul.f32 1.442695, %v300_v51  ;;  %v331_v4 = vand.u32 2147483647, %v330_v0 }
  0xca   : > { %563 = vpow2.f32 %v301_v53 }
  0xd2   : > { %v562_v61 = vpop.eup %561 }
  0xd3   : > { %v299_v2 = vmul.f32 %v562_v61, %v235_v63 }
  0xd5   : > { %v319_v8 = vmul.f32 %v318_v5, %v299_v2 }
  0xd7   : > { %v564_v1 = vpop.eup %563 }
  0xd8   : > { %v303_v6 = vmul.f32 0.0020833334, %v564_v1 }
  0xda   : > { %v313_v7 = vsel %vm312_vm6, 0.0, %v303_v6 }
  0xdb   : > { %v332_v10 = vmul.f32 %v331_v4, %v313_v7 }
  0xdd   : > { %v333_v11 = vadd.f32 %v332_v10, %v319_v8 }
  0xdf   : > { %v335_v12 = vsel %vm334_vm7, %v333_v11, 0.0 }
  0xe0   : > { %336 = vadd.xlane.f32.xlu0 %v335_v12 }
 0x169   : > { %v337_v13 = vpop.xlane.xlu0 %336 }
 0x16a   : > { %v338_v9 = vrot.slane %v337_v13, 4 }
 0x16c   : > { %v339_v14 = vadd.f32 %v338_v9, %v337_v13 }
 0x16e   : > { %v340_v3 = vrot.slane %v339_v14, 2 }
 0x170   : > { %v341_v15 = vadd.f32 %v340_v3, %v339_v14 }
 0x172   : > { %v342_v16 = vrot.slane %v341_v15, 1 }
 0x174   : > { %v343_v17 = vadd.f32 %v342_v16, %v341_v15 }
 0x176   : > { %486 = vpush %v343_v17 }
 0x1a7   : > { %s487_s30 = spop %486 }
 0x1a8   : > { %v345_v18 = vstv %s487_s30 }
 0x1a9   : > { %346 = vst [vmem:[%s218_s3] sm:$0xff] %v345_v18 }
 0x1aa   : > { %634 = shalt.err (!%p631_p6)
}
 0x1ab   : > { %s635_s5 = scalar_lea.hbm %s360_s15, 128  ;;  %s639_s27 = scalar_lea.hbm %s923_s2, 256 }
 0x1ac   : > { %p636_p7 = scmp.ne.s32.totalorder %s360_s15, %s635_s5  ;;  %p640_p4 = scmp.lt.s32.totalorder %s360_s15, %s923_s2 }
 0x1ad   : > { %p641_p10 = scmp.lt.s32.totalorder %s639_s27, %s635_s5 }
 0x1ae   : > { %p637_p1 = pnand %p636_p7, %p782_p9 }
 0x1af   : > { %p642_p8 = por %p641_p10, %p640_p4 }
 0x1b0   : > { %p638_p2 = pneg %p637_p1 }
 0x1b2   : > { %p643_p0 = pnand %p642_p8, %p638_p2 }
 0x1b4   : > { %646 = shalt.err (!%p643_p0)
}
 0x1b5   : > { %492 = dma.vmem_to_hbm [thread:$0]  (%p782_p9), %s876_s7, 128, %s360_s15, %s348_s16  }
 0x1b6 PF: > { %s374_s21 = sand.u32 1, %s685_s9   ;;  %p930_p3 = scmp.ge.s32.totalorder %s705_s14, 2 }
 0x1b7   : > { %s375_s3 = scalar_lea.sflag [#allocation4], %s374_s21 }
 0x1b8   : > { %p502_p13 = pnand %p930_p3, %p789_p11 }
 0x1ba   : > { %p503_p5 = pneg %p502_p13 }
 0x1bc   : > { %680 = dma.done.wait (%p503_p5), %s375_s3, 128  }
 0x1bd   : > { %682 = vsyncadd (%p503_p5), %s375_s3, 4294967168  ;;  %s21_s14 = sadd.s32 1, %s705_s14   ;;  %s931_s9 = smov %s689_s10 }
 0x1be   : > { %p18_p12 = scmp.ge.s32.totalorder %s21_s14, 4   ;;  %s932_s10 = smov %s693_s11 }
 0x1bf   : > { %s933_s11 = smov %s787_s23  ;;  %s934_s12 = smov %s701_s13 }
 0x1c0   : > { %s935_s13 = smov %s937_s17  ;;  %20 = sbr.rel (!%p18_p12) target bundleno = 8 (0x8), region = 88 }
 0x1c5   :  { %380 = vsyncpa [#allocation3], 1 }
 0x1c6   :  { %382 = vsyncpa [#allocation3 + $0x1], 1 }
 0x1c7   :  { %383 = vsyncpa [#allocation6], 1 }
 0x1c8   :  { %385 = vsyncpa [#allocation6 + $0x1], 1 }
 0x1c9   :  { %386 = vsyncpa [#allocation4], 1 }
 0x1ca   :  { %388 = vsyncpa [#allocation4 + $0x1], 1 }

</bundles_post_ra>
